<compile_context>
chip_gen: v7x
topology: tpu7x:2x2x1
jax: 0.10.0
libtpu: 0.0.40
codegen_flags: <defaults>
</compile_context>

<pallas_src>
import math

import jax
import jax.numpy as jnp
import numpy as np
from jax.experimental import pallas as pl
from jax.experimental.pallas import tpu as pltpu


def _round_up(x, m):
    return ((x + m - 1) // m) * m


# ----------------------------- Pallas kernel --------------------------------
def _embed_ln_kernel(wrow_ref,                       # (T, H) pre-gathered word rows (bf16)
                     ids_ref,                        # (T, 3) int32: [seg, age, posi]
                     seg_tbl_ref, age_tbl_ref, posi_tbl_ref,  # bf16 VMEM-resident tables
                     gamma_ref, beta_ref,            # (1, H) f32 LayerNorm params
                     out_ref):                       # (T, H) output tile (bf16)
    eps = 1e-12
    T = wrow_ref.shape[0]

    def onehot_gather(col, tbl_ref):
        # Gather T rows from a small VMEM-resident bf16 table via a single
        # DEFAULT-precision bf16 one-hot matmul (exact row selection of the
        # bf16-rounded values, f32 accumulation on the MXU).
        V = tbl_ref.shape[0]
        ids = ids_ref[:, col:col + 1]                                   # (T, 1)
        oh = (ids == jax.lax.broadcasted_iota(jnp.int32, (T, V), 1))    # (T, V)
        return jnp.dot(oh.astype(jnp.bfloat16), tbl_ref[...],
                       preferred_element_type=jnp.float32)              # (T, H) f32

    x = wrow_ref[...].astype(jnp.float32)
    x = x + onehot_gather(0, seg_tbl_ref)
    x = x + onehot_gather(1, age_tbl_ref)
    x = x + onehot_gather(2, posi_tbl_ref)

    # BertLayerNorm (eps=1e-12), statistics in f32.
    mean = jnp.mean(x, axis=-1, keepdims=True)
    xc = x - mean
    var = jnp.mean(xc * xc, axis=-1, keepdims=True)
    y = xc * jax.lax.rsqrt(var + eps)
    out_ref[...] = (y * gamma_ref[...] + beta_ref[...]).astype(out_ref.dtype)
    # TODO(synk): training-mode dropout would use pltpu.prng_seed +
    # pltpu.prng_random_bits to build a keep-mask; identity here (inference).


# ------------------------------- wrapper -------------------------------------
def bert_embeddings_pallas(word_ids, seg_ids, age_ids, posi_ids,
                           word_tbl, seg_tbl, age_tbl, posi_tbl,
                           gamma, beta, *, age=True, tile_tokens=1024,
                           stream_dtype=jnp.bfloat16):
    B, S = word_ids.shape
    H = word_tbl.shape[1]

    # Match the PyTorch forward's default-id handling / age flag.
    if seg_ids is None:
        seg_ids = jnp.zeros_like(word_ids)
    if age_ids is None:
        age_ids = jnp.zeros_like(word_ids)
    if posi_ids is None:
        posi_ids = jnp.zeros_like(word_ids)
    if not age:
        age_tbl = jnp.zeros((1, H), word_tbl.dtype)   # adding row 0 == no-op
        age_ids = jnp.zeros_like(age_ids)

    seg_v, age_v, pos_v = seg_tbl.shape[0], age_tbl.shape[0], posi_tbl.shape[0]
    n_tok = B * S

    # Token-tile size: big for real workloads, shrunk (but sublane-aligned)
    # for tiny test shapes.
    T = max(8, min(tile_tokens, _round_up(n_tok, 8)))
    n_pad = _round_up(n_tok, T)
    n_tiles = n_pad // T

    def flat_pad(ids):
        flat = ids.reshape(-1).astype(jnp.int32)
        return jnp.pad(flat, (0, n_pad - n_tok))      # pad ids -> row 0 (valid)

    wid = flat_pad(word_ids)
    ids_packed = jnp.stack(
        [flat_pad(seg_ids), flat_pad(age_ids), flat_pad(posi_ids)], axis=1)  # (n_pad, 3)

    # Word-table gather: fused XLA gather, emitted directly in the streaming
    # dtype (bf16) so the dominant HBM stream is half-width.
    w_rows = jnp.take(word_tbl, wid, axis=0).astype(stream_dtype)

    # Small tables resident in VMEM as bf16; gamma/beta stay f32.
    seg_b = seg_tbl.astype(jnp.bfloat16)
    age_b = age_tbl.astype(jnp.bfloat16)
    posi_b = posi_tbl.astype(jnp.bfloat16)
    gamma2 = gamma.reshape(1, H).astype(jnp.float32)
    beta2 = beta.reshape(1, H).astype(jnp.float32)

    tile2d = lambda i: (i, 0)     # streamed per-tile blocks
    const2d = lambda i: (0, 0)    # VMEM-resident blocks (fetched once)

    # Explicit VMEM budget: double-buffered in/out streams + packed ids +
    # resident tables + f32 LN / one-hot temporaries, with headroom; clamped
    # to 64 MiB so it also fits v7x's smaller physical VMEM.
    se = jnp.dtype(stream_dtype).itemsize
    vmem_est = (2 * 2 * T * H * se                      # word-row + out tiles, x2 buffers
                + 2 * T * 3 * 4                         # packed id tiles
                + (seg_v + age_v + pos_v) * H * 2       # resident bf16 tables
                + 2 * H * 4                             # gamma, beta
                + 8 * T * H * 4                         # f32 LN temporaries
                + 2 * T * max(seg_v, age_v, pos_v, 128) * 4)  # iota / one-hot temps
    vmem_limit = int(min(max(1.5 * vmem_est, 32 << 20), 64 << 20))

    def build(const_mode):
        def const_spec(shape):
            if const_mode is None:
                return pl.BlockSpec(shape, const2d)
            return pl.BlockSpec(shape, const2d, pipeline_mode=const_mode)

        return pl.pallas_call(
            _embed_ln_kernel,
            out_shape=jax.ShapeDtypeStruct((n_pad, H), stream_dtype),
            grid=(n_tiles,),
            in_specs=[
                pl.BlockSpec((T, H), tile2d),            # word rows (streamed)
                pl.BlockSpec((T, 3), tile2d),            # packed seg/age/posi ids
                const_spec((seg_v, H)),                  # resident seg table
                const_spec((age_v, H)),                  # resident age table
                const_spec((pos_v, H)),                  # resident posi table
                const_spec((1, H)),                      # gamma
                const_spec((1, H)),                      # beta
            ],
            out_specs=pl.BlockSpec((T, H), tile2d),
            # Reuse the w_rows slab as the output buffer (footprint win; each
            # tile is read one pipeline step before its writeback -> safe).
            input_output_aliases={0: 0},
            compiler_params=pltpu.CompilerParams(
                dimension_semantics=("parallel",),       # v7x: shard over both TCs
                vmem_limit_bytes=vmem_limit),
        )(w_rows, ids_packed, seg_b, age_b, posi_b, gamma2, beta2)

    try:
        # Single-buffer the constant (resident) blocks: no second VMEM copy of
        # the posi table / gamma / beta.
        out_flat = build(pl.Buffered(1))
    except Exception:
        # Fallback for jax versions without BlockSpec pipeline_mode support.
        out_flat = build(None)

    return out_flat[:n_tok].reshape(B, S, H)


# ------------------------- parameter construction ---------------------------
def init_posi_embedding(max_position_embedding, hidden_size):
    # Replicates _init_posi_embedding exactly (2*idx with idx the actual
    # column index, matching the reference code).
    lookup = np.zeros((max_position_embedding, hidden_size), dtype=np.float32)
    for pos in range(max_position_embedding):
        for idx in range(0, hidden_size, 2):
            lookup[pos, idx] = math.sin(pos / 10000 ** (2 * idx / hidden_size))
        for idx in range(1, hidden_size, 2):
            lookup[pos, idx] = math.cos(pos / 10000 ** (2 * idx / hidden_size))
    return jnp.asarray(lookup)


def make_params(key, vocab, seg_vocab, age_vocab, max_pos, H):
    k1, k2, k3 = jax.random.split(key, 3)
    word_tbl = jax.random.normal(k1, (vocab, H), jnp.float32) * 0.02
    seg_tbl = jax.random.normal(k2, (seg_vocab, H), jnp.float32) * 0.02
    age_tbl = jax.random.normal(k3, (age_vocab, H), jnp.float32) * 0.02
    posi_tbl = init_posi_embedding(max_pos, H)
    gamma = jnp.ones((H,), jnp.float32)
    beta = jnp.zeros((H,), jnp.float32)
    return word_tbl, seg_tbl, age_tbl, posi_tbl, gamma, beta


# ------------------------------ reference -----------------------------------
def bert_embeddings_ref(word_ids, seg_ids, age_ids, posi_ids,
                        word_tbl, seg_tbl, age_tbl, posi_tbl, gamma, beta):
    x = (word_tbl[word_ids] + seg_tbl[seg_ids]
         + age_tbl[age_ids] + posi_tbl[posi_ids])
    mean = jnp.mean(x, axis=-1, keepdims=True)
    var = jnp.mean((x - mean) ** 2, axis=-1, keepdims=True)
    y = (x - mean) * jax.lax.rsqrt(var + 1e-12)
    return y * gamma + beta


# -------------------------------- main ---------------------------------------
if __name__ == "__main__":
    B, S, H = 2, 8, 128
    vocab, seg_vocab, age_vocab, max_pos = 100, 2, 20, 64

    key = jax.random.PRNGKey(0)
    kp, kw, ks, ka = jax.random.split(key, 4)

    params = make_params(kp, vocab, seg_vocab, age_vocab, max_pos, H)
    word_tbl, seg_tbl, age_tbl, posi_tbl, gamma, beta = params

    word_ids = jax.random.randint(kw, (B, S), 0, vocab, dtype=jnp.int32)
    seg_ids = jax.random.randint(ks, (B, S), 0, seg_vocab, dtype=jnp.int32)
    age_ids = jax.random.randint(ka, (B, S), 0, age_vocab, dtype=jnp.int32)
    posi_ids = jnp.tile(jnp.arange(S, dtype=jnp.int32)[None, :], (B, 1))

    out = bert_embeddings_pallas(word_ids, seg_ids, age_ids, posi_ids,
                                 word_tbl, seg_tbl, age_tbl, posi_tbl,
                                 gamma, beta)
    out = jax.block_until_ready(out)

    ref = bert_embeddings_ref(word_ids, seg_ids, age_ids, posi_ids,
                              word_tbl, seg_tbl, age_tbl, posi_tbl,
                              gamma, beta)
    assert out.shape == (B, S, H)
    # bf16-streamed path: embeddings / output are rounded to bfloat16, so the
    # comparison against the pure-f32 reference uses a bf16-level tolerance.
    np.testing.assert_allclose(np.asarray(out.astype(jnp.float32)),
                               np.asarray(ref), rtol=3e-2, atol=3e-2)
    print("KERNEL_OK")
</pallas_src>

<mosaic_0001>
module attributes {stable_mosaic.version = 11 : i64} {
  func.func @_embed_ln_kernel(%arg0: i32, %arg1: memref<16x128xbf16, #tpu.memory_space<vmem>>, %arg2: memref<16x3xi32, #tpu.memory_space<vmem>>, %arg3: memref<2x128xbf16, #tpu.memory_space<vmem>>, %arg4: memref<20x128xbf16, #tpu.memory_space<vmem>>, %arg5: memref<64x128xbf16, #tpu.memory_space<vmem>>, %arg6: memref<1x128xf32, #tpu.memory_space<vmem>>, %arg7: memref<1x128xf32, #tpu.memory_space<vmem>>, %arg8: memref<16x128xbf16, #tpu.memory_space<vmem>>) attributes {dimension_semantics = [#tpu.dimension_semantics<parallel>], iteration_bounds = array<i64: 1>, scalar_prefetch = 0 : i64, scratch_operands = 0 : i64, tpu.core_type = #tpu.core_type<tc>, window_params = [{transform_indices = @transform_0, window_bounds = array<i64: 16, 128>}, {transform_indices = @transform_1, window_bounds = array<i64: 16, 3>}, {pipeline_mode = #tpu.pipeline_mode<synchronous>, transform_indices = @transform_2, window_bounds = array<i64: 2, 128>}, {pipeline_mode = #tpu.pipeline_mode<synchronous>, transform_indices = @transform_3, window_bounds = array<i64: 20, 128>}, {pipeline_mode = #tpu.pipeline_mode<synchronous>, transform_indices = @transform_4, window_bounds = array<i64: 64, 128>}, {pipeline_mode = #tpu.pipeline_mode<synchronous>, transform_indices = @transform_5, window_bounds = array<i64: 1, 128>}, {pipeline_mode = #tpu.pipeline_mode<synchronous>, transform_indices = @transform_6, window_bounds = array<i64: 1, 128>}, {transform_indices = @transform_7, window_bounds = array<i64: 16, 128>}]} {
    %c0 = arith.constant 0 : index
    %c0_0 = arith.constant 0 : index
    %0 = vector.load %arg1[%c0, %c0_0] : memref<16x128xbf16, #tpu.memory_space<vmem>>, vector<16x128xbf16>
    %1 = arith.extf %0 : vector<16x128xbf16> to vector<16x128xf32>
    %c0_1 = arith.constant 0 : index
    %c0_2 = arith.constant 0 : index
    %2 = vector.load %arg2[%c0_1, %c0_2] : memref<16x3xi32, #tpu.memory_space<vmem>>, vector<16x1xi32>
    %3 = tpu.iota {dimensions = array<i32: 1>} : vector<16x2xi32>
    %4 = vector.broadcast %2 : vector<16x1xi32> to vector<16x2xi32>
    %5 = arith.cmpi eq, %4, %3 : vector<16x2xi32>
    %6 = arith.extui %5 : vector<16x2xi1> to vector<16x2xi32>
    %7 = arith.sitofp %6 : vector<16x2xi32> to vector<16x2xf32>
    %8 = arith.truncf %7 : vector<16x2xf32> to vector<16x2xbf16>
    %c0_3 = arith.constant 0 : index
    %c0_4 = arith.constant 0 : index
    %9 = vector.load %arg3[%c0_3, %c0_4] : memref<2x128xbf16, #tpu.memory_space<vmem>>, vector<2x128xbf16>
    %cst = arith.constant dense<0.000000e+00> : vector<16x128xf32>
    %10 = tpu.matmul %8, %9, %cst {dimension_numbers = #tpu.dot_dimension_numbers<[1], [0], [0], [1], [0, 0, 1, 1], [], []>} : vector<16x2xbf16>, vector<2x128xbf16>, vector<16x128xf32> -> vector<16x128xf32>
    %11 = arith.addf %1, %10 : vector<16x128xf32>
    %c0_5 = arith.constant 0 : index
    %c1 = arith.constant 1 : index
    %12 = vector.load %arg2[%c0_5, %c1] : memref<16x3xi32, #tpu.memory_space<vmem>>, vector<16x1xi32>
    %13 = tpu.iota {dimensions = array<i32: 1>} : vector<16x20xi32>
    %14 = vector.broadcast %12 : vector<16x1xi32> to vector<16x20xi32>
    %15 = arith.cmpi eq, %14, %13 : vector<16x20xi32>
    %16 = arith.extui %15 : vector<16x20xi1> to vector<16x20xi32>
    %17 = arith.sitofp %16 : vector<16x20xi32> to vector<16x20xf32>
    %18 = arith.truncf %17 : vector<16x20xf32> to vector<16x20xbf16>
    %c0_6 = arith.constant 0 : index
    %c0_7 = arith.constant 0 : index
    %19 = vector.load %arg4[%c0_6, %c0_7] : memref<20x128xbf16, #tpu.memory_space<vmem>>, vector<20x128xbf16>
    %cst_8 = arith.constant dense<0.000000e+00> : vector<16x128xf32>
    %20 = tpu.matmul %18, %19, %cst_8 {dimension_numbers = #tpu.dot_dimension_numbers<[1], [0], [0], [1], [0, 0, 1, 1], [], []>} : vector<16x20xbf16>, vector<20x128xbf16>, vector<16x128xf32> -> vector<16x128xf32>
    %21 = arith.addf %11, %20 : vector<16x128xf32>
    %c0_9 = arith.constant 0 : index
    %c2 = arith.constant 2 : index
    %22 = vector.load %arg2[%c0_9, %c2] : memref<16x3xi32, #tpu.memory_space<vmem>>, vector<16x1xi32>
    %23 = tpu.iota {dimensions = array<i32: 1>} : vector<16x64xi32>
    %24 = vector.broadcast %22 : vector<16x1xi32> to vector<16x64xi32>
    %25 = arith.cmpi eq, %24, %23 : vector<16x64xi32>
    %26 = arith.extui %25 : vector<16x64xi1> to vector<16x64xi32>
    %27 = arith.sitofp %26 : vector<16x64xi32> to vector<16x64xf32>
    %28 = arith.truncf %27 : vector<16x64xf32> to vector<16x64xbf16>
    %c0_10 = arith.constant 0 : index
    %c0_11 = arith.constant 0 : index
    %29 = vector.load %arg5[%c0_10, %c0_11] : memref<64x128xbf16, #tpu.memory_space<vmem>>, vector<64x128xbf16>
    %cst_12 = arith.constant dense<0.000000e+00> : vector<16x128xf32>
    %30 = tpu.matmul %28, %29, %cst_12 {dimension_numbers = #tpu.dot_dimension_numbers<[1], [0], [0], [1], [0, 0, 1, 1], [], []>} : vector<16x64xbf16>, vector<64x128xbf16>, vector<16x128xf32> -> vector<16x128xf32>
    %31 = arith.addf %21, %30 : vector<16x128xf32>
    %cst_13 = arith.constant dense<0.000000e+00> : vector<16xf32>
    %32 = vector.multi_reduction <add>, %31, %cst_13 [1] : vector<16x128xf32> to vector<16xf32>
    %33 = vector.shape_cast %32 : vector<16xf32> to vector<16x1xf32>
    %cst_14 = arith.constant 1.280000e+02 : f32
    %34 = vector.broadcast %cst_14 : f32 to vector<16x1xf32>
    %35 = arith.divf %33, %34 : vector<16x1xf32>
    %36 = vector.broadcast %35 : vector<16x1xf32> to vector<16x128xf32>
    %37 = arith.subf %31, %36 : vector<16x128xf32>
    %38 = arith.mulf %37, %37 : vector<16x128xf32>
    %cst_15 = arith.constant dense<0.000000e+00> : vector<16xf32>
    %39 = vector.multi_reduction <add>, %38, %cst_15 [1] : vector<16x128xf32> to vector<16xf32>
    %40 = vector.shape_cast %39 : vector<16xf32> to vector<16x1xf32>
    %cst_16 = arith.constant 1.280000e+02 : f32
    %41 = vector.broadcast %cst_16 : f32 to vector<16x1xf32>
    %42 = arith.divf %40, %41 : vector<16x1xf32>
    %cst_17 = arith.constant 9.99999996E-13 : f32
    %43 = vector.broadcast %cst_17 : f32 to vector<16x1xf32>
    %44 = arith.addf %42, %43 : vector<16x1xf32>
    %45 = math.rsqrt %44 : vector<16x1xf32>
    %46 = vector.broadcast %45 : vector<16x1xf32> to vector<16x128xf32>
    %47 = arith.mulf %37, %46 : vector<16x128xf32>
    %c0_18 = arith.constant 0 : index
    %c0_19 = arith.constant 0 : index
    %48 = vector.load %arg6[%c0_18, %c0_19] : memref<1x128xf32, #tpu.memory_space<vmem>>, vector<1x128xf32>
    %49 = vector.broadcast %48 : vector<1x128xf32> to vector<16x128xf32>
    %50 = arith.mulf %47, %49 : vector<16x128xf32>
    %c0_20 = arith.constant 0 : index
    %c0_21 = arith.constant 0 : index
    %51 = vector.load %arg7[%c0_20, %c0_21] : memref<1x128xf32, #tpu.memory_space<vmem>>, vector<1x128xf32>
    %52 = vector.broadcast %51 : vector<1x128xf32> to vector<16x128xf32>
    %53 = arith.addf %50, %52 : vector<16x128xf32>
    %54 = arith.truncf %53 : vector<16x128xf32> to vector<16x128xbf16>
    %c0_22 = arith.constant 0 : index
    %c0_23 = arith.constant 0 : index
    %55 = vector.load %arg8[%c0_22, %c0_23] : memref<16x128xbf16, #tpu.memory_space<vmem>>, vector<16x128xbf16>
    tpu.vector_store %arg8[%c0_22, %c0_23], %54 {strides = array<i32>} : memref<16x128xbf16, #tpu.memory_space<vmem>>, vector<16x128xbf16>,
    return
  }
  func.func @transform_0(%arg0: i32) -> (i32, i32) {
    %c0_i32 = arith.constant 0 : i32
    %c0_i32_0 = arith.constant 0 : i32
    return %arg0, %c0_i32 : i32, i32
  }
  func.func @transform_1(%arg0: i32) -> (i32, i32) {
    %c0_i32 = arith.constant 0 : i32
    %c0_i32_0 = arith.constant 0 : i32
    return %arg0, %c0_i32 : i32, i32
  }
  func.func @transform_2(%arg0: i32) -> (i32, i32) {
    %c0_i32 = arith.constant 0 : i32
    %c0_i32_0 = arith.constant 0 : i32
    %c0_i32_1 = arith.constant 0 : i32
    return %c0_i32, %c0_i32_0 : i32, i32
  }
  func.func @transform_3(%arg0: i32) -> (i32, i32) {
    %c0_i32 = arith.constant 0 : i32
    %c0_i32_0 = arith.constant 0 : i32
    %c0_i32_1 = arith.constant 0 : i32
    return %c0_i32, %c0_i32_0 : i32, i32
  }
  func.func @transform_4(%arg0: i32) -> (i32, i32) {
    %c0_i32 = arith.constant 0 : i32
    %c0_i32_0 = arith.constant 0 : i32
    %c0_i32_1 = arith.constant 0 : i32
    return %c0_i32, %c0_i32_0 : i32, i32
  }
  func.func @transform_5(%arg0: i32) -> (i32, i32) {
    %c0_i32 = arith.constant 0 : i32
    %c0_i32_0 = arith.constant 0 : i32
    %c0_i32_1 = arith.constant 0 : i32
    return %c0_i32, %c0_i32_0 : i32, i32
  }
  func.func @transform_6(%arg0: i32) -> (i32, i32) {
    %c0_i32 = arith.constant 0 : i32
    %c0_i32_0 = arith.constant 0 : i32
    %c0_i32_1 = arith.constant 0 : i32
    return %c0_i32, %c0_i32_0 : i32, i32
  }
  func.func @transform_7(%arg0: i32) -> (i32, i32) {
    %c0_i32 = arith.constant 0 : i32
    %c0_i32_0 = arith.constant 0 : i32
    return %arg0, %c0_i32 : i32, i32
  }
}

module attributes {stable_mosaic.version = 11 : i64} {
  func.func @_embed_ln_kernel(%arg0: i32, %arg1: memref<16x128xbf16, #tpu.memory_space<vmem>>, %arg2: memref<16x3xi32, #tpu.memory_space<vmem>>, %arg3: memref<2x128xbf16, #tpu.memory_space<vmem>>, %arg4: memref<20x128xbf16, #tpu.memory_space<vmem>>, %arg5: memref<64x128xbf16, #tpu.memory_space<vmem>>, %arg6: memref<1x128xf32, #tpu.memory_space<vmem>>, %arg7: memref<1x128xf32, #tpu.memory_space<vmem>>, %arg8: memref<16x128xbf16, #tpu.memory_space<vmem>>) attributes {dimension_semantics = [#tpu.dimension_semantics<parallel>], iteration_bounds = array<i64: 1>, scalar_prefetch = 0 : i64, scratch_operands = 0 : i64, tpu.core_type = #tpu.core_type<tc>, window_params = [{transform_indices = @transform_0, window_bounds = array<i64: 16, 128>}, {transform_indices = @transform_1, window_bounds = array<i64: 16, 3>}, {pipeline_mode = #tpu.pipeline_mode<synchronous>, transform_indices = @transform_2, window_bounds = array<i64: 2, 128>}, {pipeline_mode = #tpu.pipeline_mode<synchronous>, transform_indices = @transform_3, window_bounds = array<i64: 20, 128>}, {pipeline_mode = #tpu.pipeline_mode<synchronous>, transform_indices = @transform_4, window_bounds = array<i64: 64, 128>}, {pipeline_mode = #tpu.pipeline_mode<synchronous>, transform_indices = @transform_5, window_bounds = array<i64: 1, 128>}, {pipeline_mode = #tpu.pipeline_mode<synchronous>, transform_indices = @transform_6, window_bounds = array<i64: 1, 128>}, {transform_indices = @transform_7, window_bounds = array<i64: 16, 128>}]} {
    %c0 = arith.constant 0 : index
    %c0_0 = arith.constant 0 : index
    %0 = vector.load %arg1[%c0, %c0_0] : memref<16x128xbf16, #tpu.memory_space<vmem>>, vector<16x128xbf16>
    %1 = arith.extf %0 : vector<16x128xbf16> to vector<16x128xf32>
    %c0_1 = arith.constant 0 : index
    %c0_2 = arith.constant 0 : index
    %2 = vector.load %arg2[%c0_1, %c0_2] : memref<16x3xi32, #tpu.memory_space<vmem>>, vector<16x1xi32>
    %3 = tpu.iota {dimensions = array<i32: 1>} : vector<16x2xi32>
    %4 = vector.broadcast %2 : vector<16x1xi32> to vector<16x2xi32>
    %5 = arith.cmpi eq, %4, %3 : vector<16x2xi32>
    %6 = arith.extui %5 : vector<16x2xi1> to vector<16x2xi32>
    %7 = arith.sitofp %6 : vector<16x2xi32> to vector<16x2xf32>
    %8 = arith.truncf %7 : vector<16x2xf32> to vector<16x2xbf16>
    %c0_3 = arith.constant 0 : index
    %c0_4 = arith.constant 0 : index
    %9 = vector.load %arg3[%c0_3, %c0_4] : memref<2x128xbf16, #tpu.memory_space<vmem>>, vector<2x128xbf16>
    %cst = arith.constant dense<0.000000e+00> : vector<16x128xf32>
    %10 = tpu.matmul %8, %9, %cst {dimension_numbers = #tpu.dot_dimension_numbers<[1], [0], [0], [1], [0, 0, 1, 1], [], []>} : vector<16x2xbf16>, vector<2x128xbf16>, vector<16x128xf32> -> vector<16x128xf32>
    %11 = arith.addf %1, %10 : vector<16x128xf32>
    %c0_5 = arith.constant 0 : index
    %c1 = arith.constant 1 : index
    %12 = vector.load %arg2[%c0_5, %c1] : memref<16x3xi32, #tpu.memory_space<vmem>>, vector<16x1xi32>
    %13 = tpu.iota {dimensions = array<i32: 1>} : vector<16x20xi32>
    %14 = vector.broadcast %12 : vector<16x1xi32> to vector<16x20xi32>
    %15 = arith.cmpi eq, %14, %13 : vector<16x20xi32>
    %16 = arith.extui %15 : vector<16x20xi1> to vector<16x20xi32>
    %17 = arith.sitofp %16 : vector<16x20xi32> to vector<16x20xf32>
    %18 = arith.truncf %17 : vector<16x20xf32> to vector<16x20xbf16>
    %c0_6 = arith.constant 0 : index
    %c0_7 = arith.constant 0 : index
    %19 = vector.load %arg4[%c0_6, %c0_7] : memref<20x128xbf16, #tpu.memory_space<vmem>>, vector<20x128xbf16>
    %cst_8 = arith.constant dense<0.000000e+00> : vector<16x128xf32>
    %20 = tpu.matmul %18, %19, %cst_8 {dimension_numbers = #tpu.dot_dimension_numbers<[1], [0], [0], [1], [0, 0, 1, 1], [], []>} : vector<16x20xbf16>, vector<20x128xbf16>, vector<16x128xf32> -> vector<16x128xf32>
    %21 = arith.addf %11, %20 : vector<16x128xf32>
    %c0_9 = arith.constant 0 : index
    %c2 = arith.constant 2 : index
    %22 = vector.load %arg2[%c0_9, %c2] : memref<16x3xi32, #tpu.memory_space<vmem>>, vector<16x1xi32>
    %23 = tpu.iota {dimensions = array<i32: 1>} : vector<16x64xi32>
    %24 = vector.broadcast %22 : vector<16x1xi32> to vector<16x64xi32>
    %25 = arith.cmpi eq, %24, %23 : vector<16x64xi32>
    %26 = arith.extui %25 : vector<16x64xi1> to vector<16x64xi32>
    %27 = arith.sitofp %26 : vector<16x64xi32> to vector<16x64xf32>
    %28 = arith.truncf %27 : vector<16x64xf32> to vector<16x64xbf16>
    %c0_10 = arith.constant 0 : index
    %c0_11 = arith.constant 0 : index
    %29 = vector.load %arg5[%c0_10, %c0_11] : memref<64x128xbf16, #tpu.memory_space<vmem>>, vector<64x128xbf16>
    %cst_12 = arith.constant dense<0.000000e+00> : vector<16x128xf32>
    %30 = tpu.matmul %28, %29, %cst_12 {dimension_numbers = #tpu.dot_dimension_numbers<[1], [0], [0], [1], [0, 0, 1, 1], [], []>} : vector<16x64xbf16>, vector<64x128xbf16>, vector<16x128xf32> -> vector<16x128xf32>
    %31 = arith.addf %21, %30 : vector<16x128xf32>
    %cst_13 = arith.constant dense<0.000000e+00> : vector<16xf32>
    %32 = vector.multi_reduction <add>, %31, %cst_13 [1] : vector<16x128xf32> to vector<16xf32>
    %33 = vector.shape_cast %32 : vector<16xf32> to vector<16x1xf32>
    %cst_14 = arith.constant 1.280000e+02 : f32
    %34 = vector.broadcast %cst_14 : f32 to vector<16x1xf32>
    %35 = arith.divf %33, %34 : vector<16x1xf32>
    %36 = vector.broadcast %35 : vector<16x1xf32> to vector<16x128xf32>
    %37 = arith.subf %31, %36 : vector<16x128xf32>
    %38 = arith.mulf %37, %37 : vector<16x128xf32>
    %cst_15 = arith.constant dense<0.000000e+00> : vector<16xf32>
    %39 = vector.multi_reduction <add>, %38, %cst_15 [1] : vector<16x128xf32> to vector<16xf32>
    %40 = vector.shape_cast %39 : vector<16xf32> to vector<16x1xf32>
    %cst_16 = arith.constant 1.280000e+02 : f32
    %41 = vector.broadcast %cst_16 : f32 to vector<16x1xf32>
    %42 = arith.divf %40, %41 : vector<16x1xf32>
    %cst_17 = arith.constant 9.99999996E-13 : f32
    %43 = vector.broadcast %cst_17 : f32 to vector<16x1xf32>
    %44 = arith.addf %42, %43 : vector<16x1xf32>
    %45 = math.rsqrt %44 : vector<16x1xf32>
    %46 = vector.broadcast %45 : vector<16x1xf32> to vector<16x128xf32>
    %47 = arith.mulf %37, %46 : vector<16x128xf32>
    %c0_18 = arith.constant 0 : index
    %c0_19 = arith.constant 0 : index
    %48 = vector.load %arg6[%c0_18, %c0_19] : memref<1x128xf32, #tpu.memory_space<vmem>>, vector<1x128xf32>
    %49 = vector.broadcast %48 : vector<1x128xf32> to vector<16x128xf32>
    %50 = arith.mulf %47, %49 : vector<16x128xf32>
    %c0_20 = arith.constant 0 : index
    %c0_21 = arith.constant 0 : index
    %51 = vector.load %arg7[%c0_20, %c0_21] : memref<1x128xf32, #tpu.memory_space<vmem>>, vector<1x128xf32>
    %52 = vector.broadcast %51 : vector<1x128xf32> to vector<16x128xf32>
    %53 = arith.addf %50, %52 : vector<16x128xf32>
    %54 = arith.truncf %53 : vector<16x128xf32> to vector<16x128xbf16>
    %c0_22 = arith.constant 0 : index
    %c0_23 = arith.constant 0 : index
    %55 = vector.load %arg8[%c0_22, %c0_23] : memref<16x128xbf16, #tpu.memory_space<vmem>>, vector<16x128xbf16>
    tpu.vector_store %arg8[%c0_22, %c0_23], %54 {strides = array<i32>} : memref<16x128xbf16, #tpu.memory_space<vmem>>, vector<16x128xbf16>,
    return
  }
  func.func @transform_0(%arg0: i32) -> (i32, i32) {
    %c0_i32 = arith.constant 0 : i32
    %c0_i32_0 = arith.constant 0 : i32
    return %arg0, %c0_i32 : i32, i32
  }
  func.func @transform_1(%arg0: i32) -> (i32, i32) {
    %c0_i32 = arith.constant 0 : i32
    %c0_i32_0 = arith.constant 0 : i32
    return %arg0, %c0_i32 : i32, i32
  }
  func.func @transform_2(%arg0: i32) -> (i32, i32) {
    %c0_i32 = arith.constant 0 : i32
    %c0_i32_0 = arith.constant 0 : i32
    %c0_i32_1 = arith.constant 0 : i32
    return %c0_i32, %c0_i32_0 : i32, i32
  }
  func.func @transform_3(%arg0: i32) -> (i32, i32) {
    %c0_i32 = arith.constant 0 : i32
    %c0_i32_0 = arith.constant 0 : i32
    %c0_i32_1 = arith.constant 0 : i32
    return %c0_i32, %c0_i32_0 : i32, i32
  }
  func.func @transform_4(%arg0: i32) -> (i32, i32) {
    %c0_i32 = arith.constant 0 : i32
    %c0_i32_0 = arith.constant 0 : i32
    %c0_i32_1 = arith.constant 0 : i32
    return %c0_i32, %c0_i32_0 : i32, i32
  }
  func.func @transform_5(%arg0: i32) -> (i32, i32) {
    %c0_i32 = arith.constant 0 : i32
    %c0_i32_0 = arith.constant 0 : i32
    %c0_i32_1 = arith.constant 0 : i32
    return %c0_i32, %c0_i32_0 : i32, i32
  }
  func.func @transform_6(%arg0: i32) -> (i32, i32) {
    %c0_i32 = arith.constant 0 : i32
    %c0_i32_0 = arith.constant 0 : i32
    %c0_i32_1 = arith.constant 0 : i32
    return %c0_i32, %c0_i32_0 : i32, i32
  }
  func.func @transform_7(%arg0: i32) -> (i32, i32) {
    %c0_i32 = arith.constant 0 : i32
    %c0_i32_0 = arith.constant 0 : i32
    return %arg0, %c0_i32 : i32, i32
  }
}

</mosaic_0001>

<bundles_post_ra>
// kernel: tpu_custom_call.1
= control target key start
LH: loop header
LB: loop body
LE: loop exit
PB: predicated region body
PF: predicated region fallthrough
CT: control target
= control target key end

     0   :  { %12 = vsyncpa [#allocation3], 0  ;;  %s627_s0 = inlined_call_operand.hbm [shape: bf16[16,128], index: 0, kind: input, shape index: {}, may-alias: {0,7}]   ;;  %s628_s1 = inlined_call_operand.vmem [shape: s32[16,3], index: 1, kind: input, shape index: {}]   ;;  %s629_s2 = inlined_call_operand.vmem [shape: bf16[2,128], index: 2, kind: input, shape index: {}]   ;;  %s630_s3 = inlined_call_operand.vmem [shape: bf16[20,128], index: 3, kind: input, shape index: {}]   ;;  %s631_s4 = inlined_call_operand.vmem [shape: bf16[64,128], index: 4, kind: input, shape index: {}]   ;;  %s632_s5 = inlined_call_operand.vmem [shape: f32[1,128], index: 5, kind: input, shape index: {}]   ;;  %s633_s6 = inlined_call_operand.vmem [shape: f32[1,128], index: 6, kind: input, shape index: {}]   ;;  %s634_s7 = inlined_call_operand.hbm [shape: bf16[16,128], index: 7, kind: output, shape index: {}, may-alias: {0,7}]  }
   0x1   :  { %13 = vsyncpa [#allocation4], 0  ;;  %s496_s24 = smov [#allocation2]   ;;  %s448_s28 = scalar_lea.hbm %s627_s0, 128 }
   0x2   :  { %s19_s25 = sshll.u32 %s496_s24, 4  ;;  %p449_p0 = scmp.ne.s32.totalorder %s627_s0, %s448_s28  ;;  %s20_s25 = int_to_ptr.vmem [resolvable:$true] %s19_s25 }
   0x3   :  { %p452_p1 = scmp.lt.u32.totalorder %s448_s28, %s627_s0 }
   0x5   :  { %p454_p2 = pnand %p452_p1, %p449_p0 }
   0x7   :  { %457 = shalt.err (!%p454_p2)
}
   0x8   :  { %s458_s10 = scalar_lea.vmem %s20_s25, 128  ;;  %p463_p4 = scmp.lt.s32.totalorder %s20_s25, %s20_s25 }
   0x9   :  { %p459_p3 = scmp.ne.s32.totalorder %s20_s25, %s458_s10  ;;  %p464_p5 = scmp.lt.s32.totalorder %s458_s10, %s458_s10 }
   0xb   :  { %p465_p6 = por %p464_p5, %p463_p4 }
   0xd   :  { %p466_p7 = pnand %p465_p6, %p459_p3 }
   0xf   :  { %469 = shalt.err (!%p466_p7)
}
  0x10   :  { %s497_s11 = smov 64   ;;  %s498_s12 = smov 4  }
  0x11   :  { %25 = dma.hbm_to_vmem [thread:$0]  %s627_s0, 128, %s20_s25, [#allocation3], %s497_s11, %s497_s11, %s498_s12  }
  0x12   :  { %492 = dma.done.wait [#allocation3], 128  }
  0x13   :  { %493 = vsyncadd [#allocation3], 4294967168  ;;  %v499_v0 = vmov 0   ;;  %v500_v1 = vmov 1   ;;  %v501_v2 = vmov 0.0   ;;  %v46_v3 = vld [vmem:[%s628_s1] sm:$0xff]  ;;  %v48_v12 = vlaneseq }
  0x14   :  { %434 = vset.pattern.permute.xlu0 %v499_v0  ;;  %435 = vset.pattern.permute.xlu1 %v500_v1  ;;  %v47_v4 = vld [vmem:[%s628_s1 + $0x8] sm:$0xff]  ;;  %v438_v5 = vld [vmem:[%s631_s4] sm:$0xff]   ;;  %vm68_vm0 = vcmask 1040384   ;;  %vm502_vm1 = vmmov 0   ;;  %v503_v9 = vmov 2   ;;  %v441_v10 = vld [vmem:[%s631_s4 + $0x10] sm:$0xff]  }
  0x15   :  { %391 = vmatprep.subr.bf16.mxu0 %v501_v2  ;;  %405 = vmatprep.subr.bf16.mxu1 %v501_v2  ;;  %v63_v6 = vld [vmem:[%s629_s2] sm:$0x1]  ;;  %v439_v8 = vld [vmem:[%s631_s4 + $0x8] sm:$0xff]   ;;  %v443_v11 = vld [vmem:[%s631_s4 + $0x18] sm:$0xff]   ;;  %v49_v13 = vand.u32 127, %v48_v12  ;;  %vm64_vm4 = vcmask 15360  }
  0x16   :  { %51 = vperm.xlu0 %434, %v46_v3   ;;  %116 = vperm.xlu1 %435, %v46_v3   ;;  %v70_v7 = vsel %vm68_vm0, %v63_v6, 0  ;;  %v440_v20 = vld [vmem:[%s630_s3] sm:$0xff]   ;;  %v442_v22 = vld [vmem:[%s630_s3 + $0x8] ss:$0 sps:$4 sm:$0x33]   ;;  %vm144_vm5 = vcmask 1041408  }
  0x17   :  { %392 = vmatpush3.bf16.msra.mxu0 %v70_v7  ;;  %406 = vmatpush3.bf16.msra.mxu1 %v438_v5  ;;  %v146_v26 = vsel %vm144_vm5, %v442_v22, 0  ;;  %vm236_vm8 = vcmask 523264   ;;  %vm140_vm11 = vcmask 162816   ;;  %v373_v33 = vld [vmem:[#allocation2] sm:$0xff]   ;;  %s504_s9 = smov [#allocation5]  }
  0x18   :  { %397 = vmatprep.subr.bf16.mxu0 %v501_v2  ;;  %407 = vmatprep.subr.bf16.mxu1 %v501_v2  ;;  %v374_v37 = vunpack.c.l.bf16 %v373_v33  ;;  %v375_v38 = vunpack.c.h.bf16 %v373_v33  ;;  %v366_v62 = vld [vmem:[%s632_s5] ss:$0 sm:$0xff]  ;;  %s339_s10 = sshll.u32 %s504_s9, 4  ;;  %s340_s10 = int_to_ptr.vmem [resolvable:$true] %s339_s10 }
  0x19   :  { %393 = vmatprep.mubr.msk.bf16.mxu0 %vm502_vm1, %v501_v2  ;;  %413 = vmatprep.mubr.msk.bf16.mxu1 %vm502_vm1, %v501_v2  ;;  %s470_s13 = scalar_lea.vmem %s340_s10, 128  ;;  %p475_p9 = scmp.lt.s32.totalorder %s340_s10, %s340_s10 }
  0x1a   :  { %54 = vperm.xlu0 %434, %v47_v4   ;;  %119 = vperm.xlu1 %435, %v47_v4   ;;  %p471_p8 = scmp.ne.s32.totalorder %s340_s10, %s470_s13  ;;  %p476_p10 = scmp.lt.s32.totalorder %s470_s13, %s470_s13 }
  0x1b   :  { %408 = vmatpush3.bf16.msra.mxu1 %v439_v8 }
  0x1c   :  { %409 = vmatprep.subr.bf16.mxu1 %v501_v2  ;;  %p477_p11 = por %p476_p10, %p475_p9 }
  0x1e   :  { %437 = vset.pattern.permute.xlu1 %v503_v9  ;;  %436 = vset.pattern.permute.xlu0 %v503_v9  ;;  %p478_p12 = pnand %p477_p11, %p471_p8 }
  0x1f   :  { %195 = vperm.xlu1 %437, %v47_v4   ;;  %192 = vperm.xlu0 %436, %v46_v3   ;;  %v367_v3 = vld [vmem:[%s633_s6] ss:$0 sm:$0xff] }
  0x20   :  { %410 = vmatpush3.bf16.msra.mxu1 %v441_v10 }
  0x21   :  { %411 = vmatprep.subr.bf16.mxu1 %v501_v2 }
  0x24   :  { %412 = vmatpush3.bf16.msra.mxu1 %v443_v11 }
  0x95   :  { %v52_v14 = vpop.permute.xlu0 %51  ;;  %v117_v15 = vpop.permute.xlu1 %116 }
  0x96   :  { %vm56_vm2 = vcmp.eq.s32.totalorder %v52_v14, %v49_v13  ;;  %vm121_vm9 = vcmp.eq.s32.totalorder %v117_v15, %v49_v13 }
  0x97   :  { %v351_v18 = vsel %vm56_vm2, 1.0, %v501_v2  ;;  %v354_v29 = vsel %vm121_vm9, 1.0, %v501_v2 }
  0x99   :  { %v55_v16 = vpop.permute.xlu0 %54  ;;  %v120_v17 = vpop.permute.xlu1 %119 }
  0x9a   :  { %vm57_vm3 = vcmp.eq.s32.totalorder %v55_v16, %v49_v13  ;;  %vm122_vm10 = vcmp.eq.s32.totalorder %v120_v17, %v49_v13 }
  0x9b   :  { %v352_v19 = vsel %vm57_vm3, 1.0, %v501_v2  ;;  %v355_v30 = vsel %vm122_vm10, 1.0, %v501_v2 }
  0x9c   :  { %v62_v21 = vpack.c.bf16 %v352_v19, %v351_v18  ;;  %v127_v31 = vpack.c.bf16 %v355_v30, %v354_v29 }
  0x9e   :  { %394 = vmatmul.mubr.msk.bf16.vlgmr.msra.gmra.mrb[0].mxu0 %vm64_vm4, %v62_v21  ;;  %v196_v23 = vpop.permute.xlu1 %195  ;;  %v193_v24 = vpop.permute.xlu0 %192 }
  0x9f   :  { %398 = vmatpush3.bf16.msra.mxu0 %v440_v20  ;;  %vm198_vm6 = vcmp.eq.s32.totalorder %v196_v23, %v49_v13  ;;  %vm197_vm7 = vcmp.eq.s32.totalorder %v193_v24, %v49_v13  ;;  %401 = vmatprep.mubr.msk.bf16.mxu0 %vm502_vm1, %v501_v2 }
  0xa0   :  { %399 = vmatprep.subr.bf16.mxu0 %v501_v2  ;;  %v360_v25 = vsel %vm198_vm6, 1.0, %v501_v2  ;;  %v359_v27 = vsel %vm197_vm7, 1.0, %v501_v2 }
  0xa1   :  { %v203_v28 = vpack.c.bf16 %v360_v25, %v359_v27 }
  0xa3   :  { %400 = vmatpush3.bf16.msra.mxu0 %v146_v26  ;;  %414 = vmatmul.mubr.msk.bf16.vlgmr.msra.gmra.mrb[0].mxu1 %vm236_vm8, %v203_v28 }
  0xaa   :  { %402 = vmatmul.mubr.msk.bf16.vlgmr.msra.gmra.mrb[0].mxu0 %vm140_vm11, %v127_v31 }
 0x176   :  { %v274_v32 = vpop.f32.mrb[0].mxu1 }
 0x177   :  { %v415_v34 = vpop.f32.mrb[1].mxu1 }
 0x178   :  { %v277_v35 = vpop.f32.mrb[2].mxu1 }
 0x179   :  { %v416_v36 = vpop.f32.mrb[3].mxu1 }
 0x17d   :  { %v182_v39 = vpop.f32.mrb[0].mxu0 }
 0x17e   :  { %v417_v40 = vadd.f32 %v374_v37, %v182_v39  ;;  %v403_v41 = vpop.f32.mrb[1].mxu0 }
 0x17f   :  { %v185_v42 = vpop.f32.mrb[2].mxu0 }
 0x180   :  { %v419_v43 = vadd.f32 %v375_v38, %v185_v42  ;;  %v404_v44 = vpop.f32.mrb[3].mxu0  ;;  %v418_v45 = vadd.f32 %v417_v40, %v274_v32 }
 0x182   :  { %283 = vadd.xlane.f32.xlu1 %v418_v45  ;;  %v420_v46 = vadd.f32 %v419_v43, %v277_v35 }
 0x184   :  { %285 = vadd.xlane.f32.xlu0 %v420_v46 }
 0x20f   :  { %v284_v47 = vpop.xlane.xlu1 %283 }
 0x210   :  { %v288_v48 = vmul.f32 0.0078125, %v284_v47 }
 0x211   :  { %v286_v49 = vpop.xlane.xlu0 %285 }
 0x212   :  { %v290_v50 = vsub.f32 %v418_v45, %v288_v48  ;;  %v289_v51 = vmul.f32 0.0078125, %v286_v49 }
 0x214   :  { %v291_v52 = vsub.f32 %v420_v46, %v289_v51  ;;  %v292_v53 = vmul.f32 %v290_v50, %v290_v50 }
 0x216   :  { %294 = vadd.xlane.f32.xlu0 %v292_v53  ;;  %v293_v54 = vmul.f32 %v291_v52, %v291_v52 }
 0x218   :  { %296 = vadd.xlane.f32.xlu1 %v293_v54 }
 0x2a3   :  { %v295_v55 = vpop.xlane.xlu0 %294 }
 0x2a4   :  { %v298_v56 = vmul.f32 0.0078125, %v295_v55 }
 0x2a5   :  { %v297_v57 = vpop.xlane.xlu1 %296 }
 0x2a6   :  { %v300_v58 = vadd.f32 1e-12, %v298_v56  ;;  %v299_v59 = vmul.f32 0.0078125, %v297_v57 }
 0x2a8   :  { %444 = vrsqrt.f32 %v300_v58  ;;  %v301_v60 = vadd.f32 1e-12, %v299_v59 }
 0x2aa   :  { %446 = vrsqrt.f32 %v301_v60 }
 0x2b2   :  { %v445_v61 = vpop.eup %444 }
 0x2b3   :  { %v304_v63 = vmul.f32 %v445_v61, %v290_v50 }
 0x2b4   :  { %v447_v0 = vpop.eup %446 }
 0x2b5   :  { %v305_v1 = vmul.f32 %v447_v0, %v291_v52  ;;  %v313_v2 = vmul.f32 %v366_v62, %v304_v63 }
 0x2b7   :  { %v314_v4 = vmul.f32 %v366_v62, %v305_v1  ;;  %v322_v5 = vadd.f32 %v367_v3, %v313_v2 }
 0x2b9   :  { %v323_v6 = vadd.f32 %v367_v3, %v314_v4 }
 0x2bb   :  { %v379_v7 = vpack.c.bf16 %v323_v6, %v322_v5 }
 0x2bd   :  { %380 = vst [vmem:[#allocation5] sm:$0xff] %v379_v7  }
 0x2be   :  { %481 = shalt.err (!%p478_p12)
}
 0x2bf   :  { %s482_s15 = scalar_lea.hbm %s634_s7, 128 }
 0x2c0   :  { %p483_p13 = scmp.ne.s32.totalorder %s634_s7, %s482_s15  ;;  %p486_p0 = scmp.lt.u32.totalorder %s482_s15, %s634_s7 }
 0x2c2   :  { %p488_p1 = pnand %p486_p0, %p483_p13 }
 0x2c4   :  { %491 = shalt.err (!%p488_p1)
}
 0x2c5   :  { %345 = dma.vmem_to_hbm [thread:$0]  %s340_s10, 128, %s634_s7, [#allocation4], %s497_s11, %s497_s11, %s498_s12  }
 0x2c6   :  { %494 = dma.done.wait [#allocation4], 128  }
 0x2c7   :  { %495 = vsyncadd [#allocation4], 4294967168 }
 0x2c8   :  { %349 = vsyncpa [#allocation3], 1 }
 0x2c9   :  { %350 = vsyncpa [#allocation4], 1 }

// kernel: tpu_custom_call.1
= control target key start
LH: loop header
LB: loop body
LE: loop exit
PB: predicated region body
PF: predicated region fallthrough
CT: control target
= control target key end

     0   :  { %12 = vsyncpa [#allocation3], 0  ;;  %s627_s0 = inlined_call_operand.hbm [shape: bf16[16,128], index: 0, kind: input, shape index: {}, may-alias: {0,7}]   ;;  %s628_s1 = inlined_call_operand.vmem [shape: s32[16,3], index: 1, kind: input, shape index: {}]   ;;  %s629_s2 = inlined_call_operand.vmem [shape: bf16[2,128], index: 2, kind: input, shape index: {}]   ;;  %s630_s3 = inlined_call_operand.vmem [shape: bf16[20,128], index: 3, kind: input, shape index: {}]   ;;  %s631_s4 = inlined_call_operand.vmem [shape: bf16[64,128], index: 4, kind: input, shape index: {}]   ;;  %s632_s5 = inlined_call_operand.vmem [shape: f32[1,128], index: 5, kind: input, shape index: {}]   ;;  %s633_s6 = inlined_call_operand.vmem [shape: f32[1,128], index: 6, kind: input, shape index: {}]   ;;  %s634_s7 = inlined_call_operand.hbm [shape: bf16[16,128], index: 7, kind: output, shape index: {}, may-alias: {0,7}]  }
   0x1   :  { %13 = vsyncpa [#allocation4], 0  ;;  %s496_s24 = smov [#allocation2]   ;;  %s448_s28 = scalar_lea.hbm %s627_s0, 128 }
   0x2   :  { %s19_s25 = sshll.u32 %s496_s24, 4  ;;  %p449_p0 = scmp.ne.s32.totalorder %s627_s0, %s448_s28  ;;  %s20_s25 = int_to_ptr.vmem [resolvable:$true] %s19_s25 }
   0x3   :  { %p452_p1 = scmp.lt.u32.totalorder %s448_s28, %s627_s0 }
   0x5   :  { %p454_p2 = pnand %p452_p1, %p449_p0 }
   0x7   :  { %457 = shalt.err (!%p454_p2)
}
   0x8   :  { %s458_s10 = scalar_lea.vmem %s20_s25, 128  ;;  %p463_p4 = scmp.lt.s32.totalorder %s20_s25, %s20_s25 }
   0x9   :  { %p459_p3 = scmp.ne.s32.totalorder %s20_s25, %s458_s10  ;;  %p464_p5 = scmp.lt.s32.totalorder %s458_s10, %s458_s10 }
   0xb   :  { %p465_p6 = por %p464_p5, %p463_p4 }
   0xd   :  { %p466_p7 = pnand %p465_p6, %p459_p3 }
   0xf   :  { %469 = shalt.err (!%p466_p7)
}
  0x10   :  { %s497_s11 = smov 64   ;;  %s498_s12 = smov 4  }
  0x11   :  { %25 = dma.hbm_to_vmem [thread:$0]  %s627_s0, 128, %s20_s25, [#allocation3], %s497_s11, %s497_s11, %s498_s12  }
  0x12   :  { %492 = dma.done.wait [#allocation3], 128  }
  0x13   :  { %493 = vsyncadd [#allocation3], 4294967168  ;;  %v499_v0 = vmov 0   ;;  %v500_v1 = vmov 1   ;;  %v501_v2 = vmov 0.0   ;;  %v46_v3 = vld [vmem:[%s628_s1] sm:$0xff]  ;;  %v48_v12 = vlaneseq }
  0x14   :  { %434 = vset.pattern.permute.xlu0 %v499_v0  ;;  %435 = vset.pattern.permute.xlu1 %v500_v1  ;;  %v47_v4 = vld [vmem:[%s628_s1 + $0x8] sm:$0xff]  ;;  %v438_v5 = vld [vmem:[%s631_s4] sm:$0xff]   ;;  %vm68_vm0 = vcmask 1040384   ;;  %vm502_vm1 = vmmov 0   ;;  %v503_v9 = vmov 2   ;;  %v441_v10 = vld [vmem:[%s631_s4 + $0x10] sm:$0xff]  }
  0x15   :  { %391 = vmatprep.subr.bf16.mxu0 %v501_v2  ;;  %405 = vmatprep.subr.bf16.mxu1 %v501_v2  ;;  %v63_v6 = vld [vmem:[%s629_s2] sm:$0x1]  ;;  %v439_v8 = vld [vmem:[%s631_s4 + $0x8] sm:$0xff]   ;;  %v443_v11 = vld [vmem:[%s631_s4 + $0x18] sm:$0xff]   ;;  %v49_v13 = vand.u32 127, %v48_v12  ;;  %vm64_vm4 = vcmask 15360  }
  0x16   :  { %51 = vperm.xlu0 %434, %v46_v3   ;;  %116 = vperm.xlu1 %435, %v46_v3   ;;  %v70_v7 = vsel %vm68_vm0, %v63_v6, 0  ;;  %v440_v20 = vld [vmem:[%s630_s3] sm:$0xff]   ;;  %v442_v22 = vld [vmem:[%s630_s3 + $0x8] ss:$0 sps:$4 sm:$0x33]   ;;  %vm144_vm5 = vcmask 1041408  }
  0x17   :  { %392 = vmatpush3.bf16.msra.mxu0 %v70_v7  ;;  %406 = vmatpush3.bf16.msra.mxu1 %v438_v5  ;;  %v146_v26 = vsel %vm144_vm5, %v442_v22, 0  ;;  %vm236_vm8 = vcmask 523264   ;;  %vm140_vm11 = vcmask 162816   ;;  %v373_v33 = vld [vmem:[#allocation2] sm:$0xff]   ;;  %s504_s9 = smov [#allocation5]  }
  0x18   :  { %397 = vmatprep.subr.bf16.mxu0 %v501_v2  ;;  %407 = vmatprep.subr.bf16.mxu1 %v501_v2  ;;  %v374_v37 = vunpack.c.l.bf16 %v373_v33  ;;  %v375_v38 = vunpack.c.h.bf16 %v373_v33  ;;  %v366_v62 = vld [vmem:[%s632_s5] ss:$0 sm:$0xff]  ;;  %s339_s10 = sshll.u32 %s504_s9, 4  ;;  %s340_s10 = int_to_ptr.vmem [resolvable:$true] %s339_s10 }
  0x19   :  { %393 = vmatprep.mubr.msk.bf16.mxu0 %vm502_vm1, %v501_v2  ;;  %413 = vmatprep.mubr.msk.bf16.mxu1 %vm502_vm1, %v501_v2  ;;  %s470_s13 = scalar_lea.vmem %s340_s10, 128  ;;  %p475_p9 = scmp.lt.s32.totalorder %s340_s10, %s340_s10 }
  0x1a   :  { %54 = vperm.xlu0 %434, %v47_v4   ;;  %119 = vperm.xlu1 %435, %v47_v4   ;;  %p471_p8 = scmp.ne.s32.totalorder %s340_s10, %s470_s13  ;;  %p476_p10 = scmp.lt.s32.totalorder %s470_s13, %s470_s13 }
  0x1b   :  { %408 = vmatpush3.bf16.msra.mxu1 %v439_v8 }
  0x1c   :  { %409 = vmatprep.subr.bf16.mxu1 %v501_v2  ;;  %p477_p11 = por %p476_p10, %p475_p9 }
  0x1e   :  { %437 = vset.pattern.permute.xlu1 %v503_v9  ;;  %436 = vset.pattern.permute.xlu0 %v503_v9  ;;  %p478_p12 = pnand %p477_p11, %p471_p8 }
  0x1f   :  { %195 = vperm.xlu1 %437, %v47_v4   ;;  %192 = vperm.xlu0 %436, %v46_v3   ;;  %v367_v3 = vld [vmem:[%s633_s6] ss:$0 sm:$0xff] }
  0x20   :  { %410 = vmatpush3.bf16.msra.mxu1 %v441_v10 }
  0x21   :  { %411 = vmatprep.subr.bf16.mxu1 %v501_v2 }
  0x24   :  { %412 = vmatpush3.bf16.msra.mxu1 %v443_v11 }
  0x95   :  { %v52_v14 = vpop.permute.xlu0 %51  ;;  %v117_v15 = vpop.permute.xlu1 %116 }
  0x96   :  { %vm56_vm2 = vcmp.eq.s32.totalorder %v52_v14, %v49_v13  ;;  %vm121_vm9 = vcmp.eq.s32.totalorder %v117_v15, %v49_v13 }
  0x97   :  { %v351_v18 = vsel %vm56_vm2, 1.0, %v501_v2  ;;  %v354_v29 = vsel %vm121_vm9, 1.0, %v501_v2 }
  0x99   :  { %v55_v16 = vpop.permute.xlu0 %54  ;;  %v120_v17 = vpop.permute.xlu1 %119 }
  0x9a   :  { %vm57_vm3 = vcmp.eq.s32.totalorder %v55_v16, %v49_v13  ;;  %vm122_vm10 = vcmp.eq.s32.totalorder %v120_v17, %v49_v13 }
  0x9b   :  { %v352_v19 = vsel %vm57_vm3, 1.0, %v501_v2  ;;  %v355_v30 = vsel %vm122_vm10, 1.0, %v501_v2 }
  0x9c   :  { %v62_v21 = vpack.c.bf16 %v352_v19, %v351_v18  ;;  %v127_v31 = vpack.c.bf16 %v355_v30, %v354_v29 }
  0x9e   :  { %394 = vmatmul.mubr.msk.bf16.vlgmr.msra.gmra.mrb[0].mxu0 %vm64_vm4, %v62_v21  ;;  %v196_v23 = vpop.permute.xlu1 %195  ;;  %v193_v24 = vpop.permute.xlu0 %192 }
  0x9f   :  { %398 = vmatpush3.bf16.msra.mxu0 %v440_v20  ;;  %vm198_vm6 = vcmp.eq.s32.totalorder %v196_v23, %v49_v13  ;;  %vm197_vm7 = vcmp.eq.s32.totalorder %v193_v24, %v49_v13  ;;  %401 = vmatprep.mubr.msk.bf16.mxu0 %vm502_vm1, %v501_v2 }
  0xa0   :  { %399 = vmatprep.subr.bf16.mxu0 %v501_v2  ;;  %v360_v25 = vsel %vm198_vm6, 1.0, %v501_v2  ;;  %v359_v27 = vsel %vm197_vm7, 1.0, %v501_v2 }
  0xa1   :  { %v203_v28 = vpack.c.bf16 %v360_v25, %v359_v27 }
  0xa3   :  { %400 = vmatpush3.bf16.msra.mxu0 %v146_v26  ;;  %414 = vmatmul.mubr.msk.bf16.vlgmr.msra.gmra.mrb[0].mxu1 %vm236_vm8, %v203_v28 }
  0xaa   :  { %402 = vmatmul.mubr.msk.bf16.vlgmr.msra.gmra.mrb[0].mxu0 %vm140_vm11, %v127_v31 }
 0x176   :  { %v274_v32 = vpop.f32.mrb[0].mxu1 }
 0x177   :  { %v415_v34 = vpop.f32.mrb[1].mxu1 }
 0x178   :  { %v277_v35 = vpop.f32.mrb[2].mxu1 }
 0x179   :  { %v416_v36 = vpop.f32.mrb[3].mxu1 }
 0x17d   :  { %v182_v39 = vpop.f32.mrb[0].mxu0 }
 0x17e   :  { %v417_v40 = vadd.f32 %v374_v37, %v182_v39  ;;  %v403_v41 = vpop.f32.mrb[1].mxu0 }
 0x17f   :  { %v185_v42 = vpop.f32.mrb[2].mxu0 }
 0x180   :  { %v419_v43 = vadd.f32 %v375_v38, %v185_v42  ;;  %v404_v44 = vpop.f32.mrb[3].mxu0  ;;  %v418_v45 = vadd.f32 %v417_v40, %v274_v32 }
 0x182   :  { %283 = vadd.xlane.f32.xlu1 %v418_v45  ;;  %v420_v46 = vadd.f32 %v419_v43, %v277_v35 }
 0x184   :  { %285 = vadd.xlane.f32.xlu0 %v420_v46 }
 0x20f   :  { %v284_v47 = vpop.xlane.xlu1 %283 }
 0x210   :  { %v288_v48 = vmul.f32 0.0078125, %v284_v47 }
 0x211   :  { %v286_v49 = vpop.xlane.xlu0 %285 }
 0x212   :  { %v290_v50 = vsub.f32 %v418_v45, %v288_v48  ;;  %v289_v51 = vmul.f32 0.0078125, %v286_v49 }
 0x214   :  { %v291_v52 = vsub.f32 %v420_v46, %v289_v51  ;;  %v292_v53 = vmul.f32 %v290_v50, %v290_v50 }
 0x216   :  { %294 = vadd.xlane.f32.xlu0 %v292_v53  ;;  %v293_v54 = vmul.f32 %v291_v52, %v291_v52 }
 0x218   :  { %296 = vadd.xlane.f32.xlu1 %v293_v54 }
 0x2a3   :  { %v295_v55 = vpop.xlane.xlu0 %294 }
 0x2a4   :  { %v298_v56 = vmul.f32 0.0078125, %v295_v55 }
 0x2a5   :  { %v297_v57 = vpop.xlane.xlu1 %296 }
 0x2a6   :  { %v300_v58 = vadd.f32 1e-12, %v298_v56  ;;  %v299_v59 = vmul.f32 0.0078125, %v297_v57 }
 0x2a8   :  { %444 = vrsqrt.f32 %v300_v58  ;;  %v301_v60 = vadd.f32 1e-12, %v299_v59 }
 0x2aa   :  { %446 = vrsqrt.f32 %v301_v60 }
 0x2b2   :  { %v445_v61 = vpop.eup %444 }
 0x2b3   :  { %v304_v63 = vmul.f32 %v445_v61, %v290_v50 }
 0x2b4   :  { %v447_v0 = vpop.eup %446 }
 0x2b5   :  { %v305_v1 = vmul.f32 %v447_v0, %v291_v52  ;;  %v313_v2 = vmul.f32 %v366_v62, %v304_v63 }
 0x2b7   :  { %v314_v4 = vmul.f32 %v366_v62, %v305_v1  ;;  %v322_v5 = vadd.f32 %v367_v3, %v313_v2 }
 0x2b9   :  { %v323_v6 = vadd.f32 %v367_v3, %v314_v4 }
 0x2bb   :  { %v379_v7 = vpack.c.bf16 %v323_v6, %v322_v5 }
 0x2bd   :  { %380 = vst [vmem:[#allocation5] sm:$0xff] %v379_v7  }
 0x2be   :  { %481 = shalt.err (!%p478_p12)
}
 0x2bf   :  { %s482_s15 = scalar_lea.hbm %s634_s7, 128 }
 0x2c0   :  { %p483_p13 = scmp.ne.s32.totalorder %s634_s7, %s482_s15  ;;  %p486_p0 = scmp.lt.u32.totalorder %s482_s15, %s634_s7 }
 0x2c2   :  { %p488_p1 = pnand %p486_p0, %p483_p13 }
 0x2c4   :  { %491 = shalt.err (!%p488_p1)
}
 0x2c5   :  { %345 = dma.vmem_to_hbm [thread:$0]  %s340_s10, 128, %s634_s7, [#allocation4], %s497_s11, %s497_s11, %s498_s12  }
 0x2c6   :  { %494 = dma.done.wait [#allocation4], 128  }
 0x2c7   :  { %495 = vsyncadd [#allocation4], 4294967168 }
 0x2c8   :  { %349 = vsyncpa [#allocation3], 1 }
 0x2c9   :  { %350 = vsyncpa [#allocation4], 1 }

</bundles_post_ra>
